<compile_context>
chip_gen: v7x
topology: tpu7x:2x2x1
jax: 0.10.0
libtpu: 0.0.40
codegen_flags: <defaults>
</compile_context>

<pallas_src>
import math
from functools import partial

import jax
import jax.numpy as jnp
from jax.experimental import pallas as pl
from jax.experimental.pallas import tpu as pltpu

# ---------------- config (consistent with the PyTorch module) ----------------
HIDDEN = 32                      # config.hidden_size
NUM_HEADS = 4                    # config.transformer['num_heads']
HEAD_DIM = HIDDEN // NUM_HEADS   # 8
ALL_HEAD = NUM_HEADS * HEAD_DIM  # 32
SEQ = 16                         # sequence length (sublane-aligned)
BATCH = 2
SCALE = 1.0 / math.sqrt(HEAD_DIM)


# ------------------------------ Pallas kernel --------------------------------
def _attn_kernel(x_ref, wqkv_ref, bqkv_ref, wo_ref, bo_ref, *out_refs, vis):
    """Fused MHSA, whole batch in one invocation.

    x_ref:    (B*S, D)        f32 activations
    wqkv_ref: (D, 3*H*Hd)     bf16, columns = [Wq.T | Wk.T | Wv.T] head-major
    bqkv_ref: (1, 3*H*Hd)     f32
    wo_ref:   (D, D)          bf16 = Wo.T
    bo_ref:   (1, D)          f32
    out_refs: (o_ref,) or (o_ref, p_ref)
      o_ref:  (B*S, D)        f32 attention output
      p_ref:  (B*H*S, S)      f32 stacked attention probs (vis=True only)
    """
    o_ref = out_refs[0]

    # ---- fused QKV projection: one (32,32)@(32,96) MXU push, f32 accumulate.
    x_bf = x_ref[...].astype(jnp.bfloat16)
    qkv = jnp.dot(x_bf, wqkv_ref[...],
                  preferred_element_type=jnp.float32) + bqkv_ref[...]   # (B*S, 96)

    # ---- per-(batch, head) scores (tiny contractions are inherent at Hd=8).
    score_blocks = []
    v_blocks = []
    for b in range(BATCH):
        r0 = b * SEQ
        for h in range(NUM_HEADS):
            c0 = h * HEAD_DIM
            q = qkv[r0:r0 + SEQ, c0:c0 + HEAD_DIM]                       # (S, Hd)
            k = qkv[r0:r0 + SEQ, ALL_HEAD + c0:ALL_HEAD + c0 + HEAD_DIM]
            v = qkv[r0:r0 + SEQ, 2 * ALL_HEAD + c0:2 * ALL_HEAD + c0 + HEAD_DIM]
            s = jnp.einsum("qe,ke->qk",
                           q.astype(jnp.bfloat16), k.astype(jnp.bfloat16),
                           preferred_element_type=jnp.float32) * SCALE   # (S, S) f32
            score_blocks.append(s)
            v_blocks.append(v.astype(jnp.bfloat16))

    # ---- one batched softmax over all (b, h) blocks, all f32 elementwise.
    scores = jnp.concatenate(score_blocks, axis=0)                       # (B*H*S, S)
    m = jnp.max(scores, axis=-1, keepdims=True)
    e = jnp.exp(scores - m)
    denom = jnp.sum(e, axis=-1, keepdims=True)
    probs = e * pl.reciprocal(denom, approx=True)                        # (B*H*S, S)

    if vis:
        out_refs[1][...] = probs                                         # debug path only

    # ---- probs @ V per (batch, head), reassembled into (B*S, H*Hd).
    probs_bf = probs.astype(jnp.bfloat16)
    batch_rows = []
    for b in range(BATCH):
        head_ctx = []
        for h in range(NUM_HEADS):
            n = b * NUM_HEADS + h
            p_blk = probs_bf[n * SEQ:(n + 1) * SEQ, :]                   # (S, S)
            head_ctx.append(jnp.dot(p_blk, v_blocks[n],
                                    preferred_element_type=jnp.float32)) # (S, Hd)
        batch_rows.append(jnp.concatenate(head_ctx, axis=1))             # (S, H*Hd)
    ctx = jnp.concatenate(batch_rows, axis=0)                            # (B*S, H*Hd)

    # ---- fused output projection: one (32,32)@(32,32) MXU push + bias.
    out = jnp.dot(ctx.astype(jnp.bfloat16), wo_ref[...],
                  preferred_element_type=jnp.float32) + bo_ref[...]      # (B*S, D)
    o_ref[...] = out.astype(o_ref.dtype)


# ------------------------------ wrapper ---------------------------------------
def attention_forward(params, hidden_states, vis=False):
    """hidden_states: (B, S, D) -> (attention_output, attention_probs or None).

    params hold PyTorch-layout Linear weights: W is (out, in), y = x @ W.T + b.
    Weight packing / reshapes are done here in plain JAX (fused by XLA, free).
    """
    B, S, D = hidden_states.shape
    assert B == BATCH and S == SEQ and D == HIDDEN

    x2d = hidden_states.reshape(B * S, D).astype(jnp.float32)
    # bf16 MXU operands (f32 accumulation inside the kernel); f32 biases.
    wqkv = jnp.concatenate(
        [params["wq"].T, params["wk"].T, params["wv"].T], axis=1).astype(jnp.bfloat16)
    bqkv = jnp.concatenate(
        [params["bq"], params["bk"], params["bv"]]).reshape(1, 3 * D).astype(jnp.float32)
    wo = params["wo"].T.astype(jnp.bfloat16)
    bo = params["bo"].reshape(1, D).astype(jnp.float32)

    vmem_spec = pl.BlockSpec(memory_space=pltpu.MemorySpace.VMEM)
    in_specs = [vmem_spec] * 5

    if vis:
        out_shape = (jax.ShapeDtypeStruct((B * S, D), jnp.float32),
                     jax.ShapeDtypeStruct((B * NUM_HEADS * S, S), jnp.float32))
        out_specs = (vmem_spec, vmem_spec)
    else:
        out_shape = jax.ShapeDtypeStruct((B * S, D), jnp.float32)
        out_specs = vmem_spec

    res = pl.pallas_call(
        partial(_attn_kernel, vis=vis),
        out_shape=out_shape,
        in_specs=in_specs,
        out_specs=out_specs,
    )(x2d, wqkv, bqkv, wo, bo)

    if vis:
        out2d, probs = res
        return (out2d.reshape(B, S, D),
                probs.reshape(B, NUM_HEADS, S, S))
    return res.reshape(B, S, D), None


# --------------------------- plain-JAX reference ------------------------------
def attention_reference(params, x):
    B, S, D = x.shape
    q = x @ params["wq"].T + params["bq"]
    k = x @ params["wk"].T + params["bk"]
    v = x @ params["wv"].T + params["bv"]

    def split(t):
        return t.reshape(B, S, NUM_HEADS, HEAD_DIM).transpose(0, 2, 1, 3)

    qh, kh, vh = split(q), split(k), split(v)
    scores = jnp.einsum("bhqe,bhke->bhqk", qh, kh) * SCALE
    probs = jax.nn.softmax(scores, axis=-1)
    ctx = jnp.einsum("bhqk,bhke->bhqe", probs, vh)
    ctx = ctx.transpose(0, 2, 1, 3).reshape(B, S, D)
    out = ctx @ params["wo"].T + params["bo"]
    return out, probs


# ------------------------------------ main ------------------------------------
if __name__ == "__main__":
    key = jax.random.PRNGKey(0)
    ks = jax.random.split(key, 9)

    def rnd(k, shape, scale=0.1):
        return jax.random.normal(k, shape, jnp.float32) * scale

    params = {
        "wq": rnd(ks[0], (HIDDEN, HIDDEN)), "bq": rnd(ks[1], (HIDDEN,)),
        "wk": rnd(ks[2], (HIDDEN, HIDDEN)), "bk": rnd(ks[3], (HIDDEN,)),
        "wv": rnd(ks[4], (HIDDEN, HIDDEN)), "bv": rnd(ks[5], (HIDDEN,)),
        "wo": rnd(ks[6], (HIDDEN, HIDDEN)), "bo": rnd(ks[7], (HIDDEN,)),
    }
    x = jax.random.normal(ks[8], (BATCH, SEQ, HIDDEN), jnp.float32)

    ref_out, ref_w = attention_reference(params, x)

    # vis=True path (probs output materialized).
    fwd_vis = jax.jit(partial(attention_forward, vis=True))
    out, weights = fwd_vis(params, x)
    jax.block_until_ready(out)
    jax.block_until_ready(weights)

    assert out.shape == (BATCH, SEQ, HIDDEN)
    assert weights.shape == (BATCH, NUM_HEADS, SEQ, SEQ)
    assert bool(jnp.all(jnp.isfinite(out)))
    assert bool(jnp.allclose(out, ref_out, atol=1e-2, rtol=1e-2))
    assert bool(jnp.allclose(weights, ref_w, atol=1e-2, rtol=1e-2))

    # vis=False common path (no probs output / writeback).
    fwd = jax.jit(partial(attention_forward, vis=False))
    out2, w2 = fwd(params, x)
    jax.block_until_ready(out2)
    assert w2 is None
    assert bool(jnp.allclose(out2, ref_out, atol=1e-2, rtol=1e-2))

    print("KERNEL_OK")
</pallas_src>

<mosaic_0001>
module attributes {stable_mosaic.version = 11 : i64} {
  func.func @_attn_kernel(%arg0: memref<32x32xf32, #tpu.memory_space<vmem>>, %arg1: memref<32x96xbf16, #tpu.memory_space<vmem>>, %arg2: memref<1x96xf32, #tpu.memory_space<vmem>>, %arg3: memref<32x32xbf16, #tpu.memory_space<vmem>>, %arg4: memref<1x32xf32, #tpu.memory_space<vmem>>, %arg5: memref<32x32xf32, #tpu.memory_space<vmem>>, %arg6: memref<128x16xf32, #tpu.memory_space<vmem>>) attributes {dimension_semantics = [], scalar_prefetch = 0 : i64, scratch_operands = 0 : i64, tpu.core_type = #tpu.core_type<tc>} {
    %c0 = arith.constant 0 : index
    %c0_0 = arith.constant 0 : index
    %0 = vector.load %arg0[%c0, %c0_0] : memref<32x32xf32, #tpu.memory_space<vmem>>, vector<32x32xf32>
    %1 = arith.truncf %0 : vector<32x32xf32> to vector<32x32xbf16>
    %c0_1 = arith.constant 0 : index
    %c0_2 = arith.constant 0 : index
    %2 = vector.load %arg1[%c0_1, %c0_2] : memref<32x96xbf16, #tpu.memory_space<vmem>>, vector<32x96xbf16>
    %cst = arith.constant dense<0.000000e+00> : vector<32x96xf32>
    %3 = tpu.matmul %1, %2, %cst {dimension_numbers = #tpu.dot_dimension_numbers<[1], [0], [0], [1], [0, 0, 1, 1], [], []>} : vector<32x32xbf16>, vector<32x96xbf16>, vector<32x96xf32> -> vector<32x96xf32>
    %c0_3 = arith.constant 0 : index
    %c0_4 = arith.constant 0 : index
    %4 = vector.load %arg2[%c0_3, %c0_4] : memref<1x96xf32, #tpu.memory_space<vmem>>, vector<1x96xf32>
    %5 = vector.broadcast %4 : vector<1x96xf32> to vector<32x96xf32>
    %6 = arith.addf %3, %5 : vector<32x96xf32>
    %7 = vector.extract_strided_slice %6 {offsets = [0, 0], sizes = [16, 8], strides = [1, 1]} : vector<32x96xf32> to vector<16x8xf32>
    %8 = vector.extract_strided_slice %6 {offsets = [0, 32], sizes = [16, 8], strides = [1, 1]} : vector<32x96xf32> to vector<16x8xf32>
    %9 = vector.extract_strided_slice %6 {offsets = [0, 64], sizes = [16, 8], strides = [1, 1]} : vector<32x96xf32> to vector<16x8xf32>
    %10 = arith.truncf %7 : vector<16x8xf32> to vector<16x8xbf16>
    %11 = arith.truncf %8 : vector<16x8xf32> to vector<16x8xbf16>
    "tpu.trace_start"() <{level = 10 : i32, message = "qe,ke->qk"}> : () -> ()
    %cst_5 = arith.constant dense<0.000000e+00> : vector<16x16xf32>
    %12 = tpu.matmul %10, %11, %cst_5 {dimension_numbers = #tpu.dot_dimension_numbers<[1], [1], [0], [0], [0, 0, 1, 0], [], []>} : vector<16x8xbf16>, vector<16x8xbf16>, vector<16x16xf32> -> vector<16x16xf32>
    "tpu.trace_stop"() : () -> ()
    %cst_6 = arith.constant 0.353553385 : f32
    %13 = vector.broadcast %cst_6 : f32 to vector<16x16xf32>
    %14 = arith.mulf %12, %13 : vector<16x16xf32>
    %15 = arith.truncf %9 : vector<16x8xf32> to vector<16x8xbf16>
    %16 = vector.extract_strided_slice %6 {offsets = [0, 8], sizes = [16, 8], strides = [1, 1]} : vector<32x96xf32> to vector<16x8xf32>
    %17 = vector.extract_strided_slice %6 {offsets = [0, 40], sizes = [16, 8], strides = [1, 1]} : vector<32x96xf32> to vector<16x8xf32>
    %18 = vector.extract_strided_slice %6 {offsets = [0, 72], sizes = [16, 8], strides = [1, 1]} : vector<32x96xf32> to vector<16x8xf32>
    %19 = arith.truncf %16 : vector<16x8xf32> to vector<16x8xbf16>
    %20 = arith.truncf %17 : vector<16x8xf32> to vector<16x8xbf16>
    "tpu.trace_start"() <{level = 10 : i32, message = "qe,ke->qk"}> : () -> ()
    %cst_7 = arith.constant dense<0.000000e+00> : vector<16x16xf32>
    %21 = tpu.matmul %19, %20, %cst_7 {dimension_numbers = #tpu.dot_dimension_numbers<[1], [1], [0], [0], [0, 0, 1, 0], [], []>} : vector<16x8xbf16>, vector<16x8xbf16>, vector<16x16xf32> -> vector<16x16xf32>
    "tpu.trace_stop"() : () -> ()
    %cst_8 = arith.constant 0.353553385 : f32
    %22 = vector.broadcast %cst_8 : f32 to vector<16x16xf32>
    %23 = arith.mulf %21, %22 : vector<16x16xf32>
    %24 = arith.truncf %18 : vector<16x8xf32> to vector<16x8xbf16>
    %25 = vector.extract_strided_slice %6 {offsets = [0, 16], sizes = [16, 8], strides = [1, 1]} : vector<32x96xf32> to vector<16x8xf32>
    %26 = vector.extract_strided_slice %6 {offsets = [0, 48], sizes = [16, 8], strides = [1, 1]} : vector<32x96xf32> to vector<16x8xf32>
    %27 = vector.extract_strided_slice %6 {offsets = [0, 80], sizes = [16, 8], strides = [1, 1]} : vector<32x96xf32> to vector<16x8xf32>
    %28 = arith.truncf %25 : vector<16x8xf32> to vector<16x8xbf16>
    %29 = arith.truncf %26 : vector<16x8xf32> to vector<16x8xbf16>
    "tpu.trace_start"() <{level = 10 : i32, message = "qe,ke->qk"}> : () -> ()
    %cst_9 = arith.constant dense<0.000000e+00> : vector<16x16xf32>
    %30 = tpu.matmul %28, %29, %cst_9 {dimension_numbers = #tpu.dot_dimension_numbers<[1], [1], [0], [0], [0, 0, 1, 0], [], []>} : vector<16x8xbf16>, vector<16x8xbf16>, vector<16x16xf32> -> vector<16x16xf32>
    "tpu.trace_stop"() : () -> ()
    %cst_10 = arith.constant 0.353553385 : f32
    %31 = vector.broadcast %cst_10 : f32 to vector<16x16xf32>
    %32 = arith.mulf %30, %31 : vector<16x16xf32>
    %33 = arith.truncf %27 : vector<16x8xf32> to vector<16x8xbf16>
    %34 = vector.extract_strided_slice %6 {offsets = [0, 24], sizes = [16, 8], strides = [1, 1]} : vector<32x96xf32> to vector<16x8xf32>
    %35 = vector.extract_strided_slice %6 {offsets = [0, 56], sizes = [16, 8], strides = [1, 1]} : vector<32x96xf32> to vector<16x8xf32>
    %36 = vector.extract_strided_slice %6 {offsets = [0, 88], sizes = [16, 8], strides = [1, 1]} : vector<32x96xf32> to vector<16x8xf32>
    %37 = arith.truncf %34 : vector<16x8xf32> to vector<16x8xbf16>
    %38 = arith.truncf %35 : vector<16x8xf32> to vector<16x8xbf16>
    "tpu.trace_start"() <{level = 10 : i32, message = "qe,ke->qk"}> : () -> ()
    %cst_11 = arith.constant dense<0.000000e+00> : vector<16x16xf32>
    %39 = tpu.matmul %37, %38, %cst_11 {dimension_numbers = #tpu.dot_dimension_numbers<[1], [1], [0], [0], [0, 0, 1, 0], [], []>} : vector<16x8xbf16>, vector<16x8xbf16>, vector<16x16xf32> -> vector<16x16xf32>
    "tpu.trace_stop"() : () -> ()
    %cst_12 = arith.constant 0.353553385 : f32
    %40 = vector.broadcast %cst_12 : f32 to vector<16x16xf32>
    %41 = arith.mulf %39, %40 : vector<16x16xf32>
    %42 = arith.truncf %36 : vector<16x8xf32> to vector<16x8xbf16>
    %43 = vector.extract_strided_slice %6 {offsets = [16, 0], sizes = [16, 8], strides = [1, 1]} : vector<32x96xf32> to vector<16x8xf32>
    %44 = vector.extract_strided_slice %6 {offsets = [16, 32], sizes = [16, 8], strides = [1, 1]} : vector<32x96xf32> to vector<16x8xf32>
    %45 = vector.extract_strided_slice %6 {offsets = [16, 64], sizes = [16, 8], strides = [1, 1]} : vector<32x96xf32> to vector<16x8xf32>
    %46 = arith.truncf %43 : vector<16x8xf32> to vector<16x8xbf16>
    %47 = arith.truncf %44 : vector<16x8xf32> to vector<16x8xbf16>
    "tpu.trace_start"() <{level = 10 : i32, message = "qe,ke->qk"}> : () -> ()
    %cst_13 = arith.constant dense<0.000000e+00> : vector<16x16xf32>
    %48 = tpu.matmul %46, %47, %cst_13 {dimension_numbers = #tpu.dot_dimension_numbers<[1], [1], [0], [0], [0, 0, 1, 0], [], []>} : vector<16x8xbf16>, vector<16x8xbf16>, vector<16x16xf32> -> vector<16x16xf32>
    "tpu.trace_stop"() : () -> ()
    %cst_14 = arith.constant 0.353553385 : f32
    %49 = vector.broadcast %cst_14 : f32 to vector<16x16xf32>
    %50 = arith.mulf %48, %49 : vector<16x16xf32>
    %51 = arith.truncf %45 : vector<16x8xf32> to vector<16x8xbf16>
    %52 = vector.extract_strided_slice %6 {offsets = [16, 8], sizes = [16, 8], strides = [1, 1]} : vector<32x96xf32> to vector<16x8xf32>
    %53 = vector.extract_strided_slice %6 {offsets = [16, 40], sizes = [16, 8], strides = [1, 1]} : vector<32x96xf32> to vector<16x8xf32>
    %54 = vector.extract_strided_slice %6 {offsets = [16, 72], sizes = [16, 8], strides = [1, 1]} : vector<32x96xf32> to vector<16x8xf32>
    %55 = arith.truncf %52 : vector<16x8xf32> to vector<16x8xbf16>
    %56 = arith.truncf %53 : vector<16x8xf32> to vector<16x8xbf16>
    "tpu.trace_start"() <{level = 10 : i32, message = "qe,ke->qk"}> : () -> ()
    %cst_15 = arith.constant dense<0.000000e+00> : vector<16x16xf32>
    %57 = tpu.matmul %55, %56, %cst_15 {dimension_numbers = #tpu.dot_dimension_numbers<[1], [1], [0], [0], [0, 0, 1, 0], [], []>} : vector<16x8xbf16>, vector<16x8xbf16>, vector<16x16xf32> -> vector<16x16xf32>
    "tpu.trace_stop"() : () -> ()
    %cst_16 = arith.constant 0.353553385 : f32
    %58 = vector.broadcast %cst_16 : f32 to vector<16x16xf32>
    %59 = arith.mulf %57, %58 : vector<16x16xf32>
    %60 = arith.truncf %54 : vector<16x8xf32> to vector<16x8xbf16>
    %61 = vector.extract_strided_slice %6 {offsets = [16, 16], sizes = [16, 8], strides = [1, 1]} : vector<32x96xf32> to vector<16x8xf32>
    %62 = vector.extract_strided_slice %6 {offsets = [16, 48], sizes = [16, 8], strides = [1, 1]} : vector<32x96xf32> to vector<16x8xf32>
    %63 = vector.extract_strided_slice %6 {offsets = [16, 80], sizes = [16, 8], strides = [1, 1]} : vector<32x96xf32> to vector<16x8xf32>
    %64 = arith.truncf %61 : vector<16x8xf32> to vector<16x8xbf16>
    %65 = arith.truncf %62 : vector<16x8xf32> to vector<16x8xbf16>
    "tpu.trace_start"() <{level = 10 : i32, message = "qe,ke->qk"}> : () -> ()
    %cst_17 = arith.constant dense<0.000000e+00> : vector<16x16xf32>
    %66 = tpu.matmul %64, %65, %cst_17 {dimension_numbers = #tpu.dot_dimension_numbers<[1], [1], [0], [0], [0, 0, 1, 0], [], []>} : vector<16x8xbf16>, vector<16x8xbf16>, vector<16x16xf32> -> vector<16x16xf32>
    "tpu.trace_stop"() : () -> ()
    %cst_18 = arith.constant 0.353553385 : f32
    %67 = vector.broadcast %cst_18 : f32 to vector<16x16xf32>
    %68 = arith.mulf %66, %67 : vector<16x16xf32>
    %69 = arith.truncf %63 : vector<16x8xf32> to vector<16x8xbf16>
    %70 = vector.extract_strided_slice %6 {offsets = [16, 24], sizes = [16, 8], strides = [1, 1]} : vector<32x96xf32> to vector<16x8xf32>
    %71 = vector.extract_strided_slice %6 {offsets = [16, 56], sizes = [16, 8], strides = [1, 1]} : vector<32x96xf32> to vector<16x8xf32>
    %72 = vector.extract_strided_slice %6 {offsets = [16, 88], sizes = [16, 8], strides = [1, 1]} : vector<32x96xf32> to vector<16x8xf32>
    %73 = arith.truncf %70 : vector<16x8xf32> to vector<16x8xbf16>
    %74 = arith.truncf %71 : vector<16x8xf32> to vector<16x8xbf16>
    "tpu.trace_start"() <{level = 10 : i32, message = "qe,ke->qk"}> : () -> ()
    %cst_19 = arith.constant dense<0.000000e+00> : vector<16x16xf32>
    %75 = tpu.matmul %73, %74, %cst_19 {dimension_numbers = #tpu.dot_dimension_numbers<[1], [1], [0], [0], [0, 0, 1, 0], [], []>} : vector<16x8xbf16>, vector<16x8xbf16>, vector<16x16xf32> -> vector<16x16xf32>
    "tpu.trace_stop"() : () -> ()
    %cst_20 = arith.constant 0.353553385 : f32
    %76 = vector.broadcast %cst_20 : f32 to vector<16x16xf32>
    %77 = arith.mulf %75, %76 : vector<16x16xf32>
    %78 = arith.truncf %72 : vector<16x8xf32> to vector<16x8xbf16>
    %79 = tpu.concatenate %14, %23, %32, %41, %50, %59, %68, %77 in 0 : vector<16x16xf32>, vector<16x16xf32>, vector<16x16xf32>, vector<16x16xf32>, vector<16x16xf32>, vector<16x16xf32>, vector<16x16xf32>, vector<16x16xf32> -> vector<128x16xf32>
    %cst_21 = arith.constant dense<0xFF800000> : vector<128xf32>
    %80 = vector.multi_reduction <maximumf>, %79, %cst_21 [1] : vector<128x16xf32> to vector<128xf32>
    %81 = vector.shape_cast %80 : vector<128xf32> to vector<128x1xf32>
    %82 = vector.broadcast %81 : vector<128x1xf32> to vector<128x16xf32>
    %83 = arith.subf %79, %82 : vector<128x16xf32>
    %84 = math.exp %83 : vector<128x16xf32>
    %cst_22 = arith.constant dense<0.000000e+00> : vector<128xf32>
    %85 = vector.multi_reduction <add>, %84, %cst_22 [1] : vector<128x16xf32> to vector<128xf32>
    %86 = vector.shape_cast %85 : vector<128xf32> to vector<128x1xf32>
    %87 = tpu.reciprocal %86 {approx = true} : vector<128x1xf32> -> vector<128x1xf32>
    %88 = vector.broadcast %87 : vector<128x1xf32> to vector<128x16xf32>
    %89 = arith.mulf %84, %88 : vector<128x16xf32>
    %c0_23 = arith.constant 0 : index
    %c0_24 = arith.constant 0 : index
    %90 = vector.load %arg6[%c0_23, %c0_24] : memref<128x16xf32, #tpu.memory_space<vmem>>, vector<128x16xf32>
    tpu.vector_store %arg6[%c0_23, %c0_24], %89 {strides = array<i32>} : memref<128x16xf32, #tpu.memory_space<vmem>>, vector<128x16xf32>,
    %91 = arith.truncf %89 : vector<128x16xf32> to vector<128x16xbf16>
    %92 = vector.extract_strided_slice %91 {offsets = [0, 0], sizes = [16, 16], strides = [1, 1]} : vector<128x16xbf16> to vector<16x16xbf16>
    %cst_25 = arith.constant dense<0.000000e+00> : vector<16x8xf32>
    %93 = tpu.matmul %92, %15, %cst_25 {dimension_numbers = #tpu.dot_dimension_numbers<[1], [0], [0], [1], [0, 0, 1, 1], [], []>} : vector<16x16xbf16>, vector<16x8xbf16>, vector<16x8xf32> -> vector<16x8xf32>
    %94 = vector.extract_strided_slice %91 {offsets = [16, 0], sizes = [16, 16], strides = [1, 1]} : vector<128x16xbf16> to vector<16x16xbf16>
    %cst_26 = arith.constant dense<0.000000e+00> : vector<16x8xf32>
    %95 = tpu.matmul %94, %24, %cst_26 {dimension_numbers = #tpu.dot_dimension_numbers<[1], [0], [0], [1], [0, 0, 1, 1], [], []>} : vector<16x16xbf16>, vector<16x8xbf16>, vector<16x8xf32> -> vector<16x8xf32>
    %96 = vector.extract_strided_slice %91 {offsets = [32, 0], sizes = [16, 16], strides = [1, 1]} : vector<128x16xbf16> to vector<16x16xbf16>
    %cst_27 = arith.constant dense<0.000000e+00> : vector<16x8xf32>
    %97 = tpu.matmul %96, %33, %cst_27 {dimension_numbers = #tpu.dot_dimension_numbers<[1], [0], [0], [1], [0, 0, 1, 1], [], []>} : vector<16x16xbf16>, vector<16x8xbf16>, vector<16x8xf32> -> vector<16x8xf32>
    %98 = vector.extract_strided_slice %91 {offsets = [48, 0], sizes = [16, 16], strides = [1, 1]} : vector<128x16xbf16> to vector<16x16xbf16>
    %cst_28 = arith.constant dense<0.000000e+00> : vector<16x8xf32>
    %99 = tpu.matmul %98, %42, %cst_28 {dimension_numbers = #tpu.dot_dimension_numbers<[1], [0], [0], [1], [0, 0, 1, 1], [], []>} : vector<16x16xbf16>, vector<16x8xbf16>, vector<16x8xf32> -> vector<16x8xf32>
    %100 = tpu.concatenate %93, %95, %97, %99 in 1 : vector<16x8xf32>, vector<16x8xf32>, vector<16x8xf32>, vector<16x8xf32> -> vector<16x32xf32>
    %101 = vector.extract_strided_slice %91 {offsets = [64, 0], sizes = [16, 16], strides = [1, 1]} : vector<128x16xbf16> to vector<16x16xbf16>
    %cst_29 = arith.constant dense<0.000000e+00> : vector<16x8xf32>
    %102 = tpu.matmul %101, %51, %cst_29 {dimension_numbers = #tpu.dot_dimension_numbers<[1], [0], [0], [1], [0, 0, 1, 1], [], []>} : vector<16x16xbf16>, vector<16x8xbf16>, vector<16x8xf32> -> vector<16x8xf32>
    %103 = vector.extract_strided_slice %91 {offsets = [80, 0], sizes = [16, 16], strides = [1, 1]} : vector<128x16xbf16> to vector<16x16xbf16>
    %cst_30 = arith.constant dense<0.000000e+00> : vector<16x8xf32>
    %104 = tpu.matmul %103, %60, %cst_30 {dimension_numbers = #tpu.dot_dimension_numbers<[1], [0], [0], [1], [0, 0, 1, 1], [], []>} : vector<16x16xbf16>, vector<16x8xbf16>, vector<16x8xf32> -> vector<16x8xf32>
    %105 = vector.extract_strided_slice %91 {offsets = [96, 0], sizes = [16, 16], strides = [1, 1]} : vector<128x16xbf16> to vector<16x16xbf16>
    %cst_31 = arith.constant dense<0.000000e+00> : vector<16x8xf32>
    %106 = tpu.matmul %105, %69, %cst_31 {dimension_numbers = #tpu.dot_dimension_numbers<[1], [0], [0], [1], [0, 0, 1, 1], [], []>} : vector<16x16xbf16>, vector<16x8xbf16>, vector<16x8xf32> -> vector<16x8xf32>
    %107 = vector.extract_strided_slice %91 {offsets = [112, 0], sizes = [16, 16], strides = [1, 1]} : vector<128x16xbf16> to vector<16x16xbf16>
    %cst_32 = arith.constant dense<0.000000e+00> : vector<16x8xf32>
    %108 = tpu.matmul %107, %78, %cst_32 {dimension_numbers = #tpu.dot_dimension_numbers<[1], [0], [0], [1], [0, 0, 1, 1], [], []>} : vector<16x16xbf16>, vector<16x8xbf16>, vector<16x8xf32> -> vector<16x8xf32>
    %109 = tpu.concatenate %102, %104, %106, %108 in 1 : vector<16x8xf32>, vector<16x8xf32>, vector<16x8xf32>, vector<16x8xf32> -> vector<16x32xf32>
    %110 = tpu.concatenate %100, %109 in 0 : vector<16x32xf32>, vector<16x32xf32> -> vector<32x32xf32>
    %111 = arith.truncf %110 : vector<32x32xf32> to vector<32x32xbf16>
    %c0_33 = arith.constant 0 : index
    %c0_34 = arith.constant 0 : index
    %112 = vector.load %arg3[%c0_33, %c0_34] : memref<32x32xbf16, #tpu.memory_space<vmem>>, vector<32x32xbf16>
    %cst_35 = arith.constant dense<0.000000e+00> : vector<32x32xf32>
    %113 = tpu.matmul %111, %112, %cst_35 {dimension_numbers = #tpu.dot_dimension_numbers<[1], [0], [0], [1], [0, 0, 1, 1], [], []>} : vector<32x32xbf16>, vector<32x32xbf16>, vector<32x32xf32> -> vector<32x32xf32>
    %c0_36 = arith.constant 0 : index
    %c0_37 = arith.constant 0 : index
    %114 = vector.load %arg4[%c0_36, %c0_37] : memref<1x32xf32, #tpu.memory_space<vmem>>, vector<1x32xf32>
    %115 = vector.broadcast %114 : vector<1x32xf32> to vector<32x32xf32>
    %116 = arith.addf %113, %115 : vector<32x32xf32>
    %c0_38 = arith.constant 0 : index
    %c0_39 = arith.constant 0 : index
    %117 = vector.load %arg5[%c0_38, %c0_39] : memref<32x32xf32, #tpu.memory_space<vmem>>, vector<32x32xf32>
    tpu.vector_store %arg5[%c0_38, %c0_39], %116 {strides = array<i32>} : memref<32x32xf32, #tpu.memory_space<vmem>>, vector<32x32xf32>,
    return
  }
}

</mosaic_0001>

<bundles_post_ra>
// kernel: attention_forward.1
= control target key start
LH: loop header
LB: loop body
LE: loop exit
PB: predicated region body
PF: predicated region fallthrough
CT: control target
= control target key end

     0   :  { %12 = vsyncpa [#allocation3], 0  ;;  %vm54_vm0 = vcmask 261120   ;;  %s2061_s0 = inlined_call_operand.vmem [shape: f32[32,32], index: 0, kind: input, shape index: {}]   ;;  %s2062_s1 = inlined_call_operand.vmem [shape: bf16[32,96], index: 1, kind: input, shape index: {}]   ;;  %s2063_s2 = inlined_call_operand.vmem [shape: f32[1,96], index: 2, kind: input, shape index: {}]   ;;  %s2064_s3 = inlined_call_operand.vmem [shape: bf16[32,32], index: 3, kind: input, shape index: {}]   ;;  %s2065_s4 = inlined_call_operand.vmem [shape: f32[1,32], index: 4, kind: input, shape index: {}]   ;;  %s2066_s5 = inlined_call_operand.hbm [shape: f32[32,32], index: 5, kind: output, shape index: {0}]   ;;  %s2067_s6 = inlined_call_operand.hbm [shape: f32[128,16], index: 6, kind: output, shape index: {1}]  }
   0x1   :  { %v1516_v0 = vld [vmem:[%s2062_s1] sm:$0xff]   ;;  %v1517_v1 = vld [vmem:[%s2062_s1 + $0x8] sm:$0xff]   ;;  %v27_v4 = vld [vmem:[%s2061_s0 + $0x10] sm:$0xff] }
   0x2   :  { %1355 = vmatprep.subr.bf16.mxu0 %v1516_v0  ;;  %v25_v2 = vld [vmem:[%s2061_s0] sm:$0xff]  ;;  %v26_v3 = vld [vmem:[%s2061_s0 + $0x8] sm:$0xff]  ;;  %v28_v6 = vld [vmem:[%s2061_s0 + $0x18] sm:$0xff] }
   0x3   :  { %1356 = vmatpush3.bf16.msra.mxu0 %v1516_v0  ;;  %v29_v5 = vpack.c.bf16 %v26_v3, %v25_v2 }
   0x4   :  { %1357 = vmatprep.subr.bf16.mxu0 %v1517_v1 }
   0x5   :  { %13 = vsyncpa [#allocation5], 0  ;;  %1359 = vmatprep.mubr.msk.bf16.mxu0 %vm54_vm0, %v29_v5  ;;  %v30_v7 = vpack.c.bf16 %v28_v6, %v27_v4  ;;  %v1632_v8 = vmov 0.0   ;;  %v1289_v10 = vld [vmem:[%s2063_s2] ss:$0 sm:$0xff]  ;;  %vm1633_vm1 = vmmov 0  }
   0x6   :  { %1363 = vmatprep.subr.bf16.mxu1 %v1632_v8  ;;  %1365 = vmatprep.mubr.msk.bf16.mxu1 %vm1633_vm1, %v1632_v8  ;;  %s1634_s0 = smov 80   ;;  %s1635_s2 = smov 96   ;;  %vm114_vm2 = vcmask 64512   ;;  %vm535_vm3 = vcmask 130048   ;;  %vm952_vm4 = vcmask 195584  }
   0x7   :  { %1358 = vmatpush3.bf16.msra.mxu0 %v1517_v1  ;;  %s1636_s10 = smov 120   ;;  %s1637_s11 = smov 88  }
   0x8   :  { %1369 = vmatprep.subr.bf16.mxu0 %v1632_v8  ;;  %s1638_s12 = smov 112   ;;  %s1639_s13 = smov 72  }
   0x9   :  { %s1640_s14 = smov 104   ;;  %s1641_s15 = smov 64  }
   0xa   :  { %1360 = vmatmul.mubr.msk.bf16.vlgmr.msra.gmra.mrb[0].mxu0 %vm54_vm0, %v30_v7  ;;  %s1642_s16 = smov 48   ;;  %s1643_s17 = smov 40  }
   0xb   :  { %1371 = vmatprep.mubr.msk.bf16.mxu0 %vm1633_vm1, %v1632_v8  ;;  %s1644_s18 = smov 56   ;;  %s1645_s19 = smov 8  }
   0xc   :  { %s1646_s20 = smov 16   ;;  %s1647_s23 = smov 24  }
  0xdd   :  { %v1361_v9 = vpop.f32.mrb[0].mxu0 }
  0xde   :  { %v95_v11 = vpop.f32.mrb[1].mxu0  ;;  %v104_v13 = vadd.f32 %v1361_v9, %v1289_v10 }
  0xdf   :  { %v1362_v12 = vpop.f32.mrb[2].mxu0  ;;  %v96_v16 = vadd.f32 %v1289_v10, %v95_v11 }
  0xe0   :  { %v107_v14 = vadd.f32 %v1362_v12, %v1289_v10  ;;  %v98_v15 = vpop.f32.mrb[3].mxu0 }
  0xe1   :  { %v99_v17 = vadd.f32 %v1289_v10, %v98_v15 }
  0xe2   :  { %v1715_v18 = vpack.c.bf16 %v107_v14, %v104_v13 }
  0xe3   :  { %v1717_v19 = vpack.c.bf16 %v99_v17, %v96_v16 }
  0xe5   :  { %219 = vrot.lane.b32.xlu1 %v1717_v19, %s1634_s0  ;;  %112 = vrot.lane.b32.xlu0 %v1717_v19, %s1635_s2 }
  0xe9   :  { %164 = vrot.lane.b32.xlu1 %v1717_v19, %s1636_s10  ;;  %166 = vrot.lane.b32.xlu0 %v1717_v19, %s1637_s11 }
  0xed   :  { %217 = vrot.lane.b32.xlu1 %v1717_v19, %s1638_s12  ;;  %272 = vrot.lane.b32.xlu0 %v1717_v19, %s1639_s13 }
  0xf1   :  { %270 = vrot.lane.b32.xlu1 %v1717_v19, %s1640_s14  ;;  %325 = vrot.lane.b32.xlu0 %v1715_v18, %s1635_s2 }
  0xf5   :  { %431 = vrot.lane.b32.xlu1 %v1715_v18, %s1634_s0  ;;  %378 = vrot.lane.b32.xlu0 %v1715_v18, %s1637_s11 }
  0xf9   :  { %484 = vrot.lane.b32.xlu1 %v1715_v18, %s1639_s13  ;;  %376 = vrot.lane.b32.xlu0 %v1715_v18, %s1636_s10 }
  0xfd   :  { %482 = vrot.lane.b32.xlu1 %v1715_v18, %s1640_s14  ;;  %429 = vrot.lane.b32.xlu0 %v1715_v18, %s1638_s12 }
 0x101   :  { %736 = vrot.lane.b32.xlu1 %v1717_v19, %s1641_s15 }
 0x157   :  { %v220_v20 = vpop.permute.xlu1 %219  ;;  %v113_v21 = vpop.permute.xlu0 %112 }
 0x158   :  { %v119_v22 = vsel %vm114_vm2, %v113_v21, 0  ;;  %v225_v28 = vsel %vm114_vm2, %v220_v20, 0 }
 0x159   :  { %1364 = vmatpush3.bf16.xpose.msra.mxu1 %v119_v22 }
 0x15a   :  { %1375 = vmatprep.subr.bf16.mxu1 %v1632_v8 }
 0x15b   :  { %v165_v23 = vpop.permute.xlu1 %164  ;;  %v167_v24 = vpop.permute.xlu0 %166 }
 0x15c   :  { %v172_v25 = vsel %vm114_vm2, %v167_v24, 0 }
 0x15d   :  { %1370 = vmatpush3.bf16.xpose.msra.mxu0 %v172_v25 }
 0x15e   :  { %1381 = vmatprep.subr.bf16.mxu0 %v1632_v8 }
 0x15f   :  { %v218_v26 = vpop.permute.xlu1 %217  ;;  %v273_v27 = vpop.permute.xlu0 %272 }
 0x160   :  { %1366 = vmatmul.mubr.msk.bf16.vlgmr.msra.gmra.mrb[0].mxu1 %vm114_vm2, %v1717_v19  ;;  %v278_v31 = vsel %vm114_vm2, %v273_v27, 0 }
 0x161   :  { %1376 = vmatpush3.bf16.xpose.msra.mxu1 %v225_v28  ;;  %1377 = vmatprep.mubr.msk.bf16.mxu1 %vm1633_vm1, %v1632_v8 }
 0x162   :  { %1387 = vmatprep.subr.bf16.mxu1 %v1632_v8 }
 0x163   :  { %v271_v29 = vpop.permute.xlu1 %270  ;;  %v326_v30 = vpop.permute.xlu0 %325 }
 0x164   :  { %1372 = vmatmul.mubr.msk.bf16.vlgmr.msra.gmra.mrb[4].mxu0 %vm114_vm2, %v165_v23  ;;  %v331_v33 = vsel %vm114_vm2, %v326_v30, 0 }
 0x165   :  { %1382 = vmatpush3.bf16.xpose.msra.mxu0 %v278_v31  ;;  %1383 = vmatprep.mubr.msk.bf16.mxu0 %vm1633_vm1, %v1632_v8 }
 0x166   :  { %1393 = vmatprep.subr.bf16.mxu0 %v1632_v8 }
 0x167   :  { %v432_v32 = vpop.permute.xlu1 %431  ;;  %v379_v34 = vpop.permute.xlu0 %378 }
 0x168   :  { %1378 = vmatmul.mubr.msk.bf16.vlgmr.msra.gmra.mrb[4].mxu1 %vm114_vm2, %v218_v26  ;;  %v384_v35 = vsel %vm114_vm2, %v379_v34, 0  ;;  %v437_v37 = vsel %vm114_vm2, %v432_v32, 0 }
 0x169   :  { %1388 = vmatpush3.bf16.xpose.msra.mxu1 %v331_v33  ;;  %1389 = vmatprep.mubr.msk.bf16.mxu1 %vm1633_vm1, %v1632_v8 }
 0x16a   :  { %1399 = vmatprep.subr.bf16.mxu1 %v1632_v8 }
 0x16b   :  { %v485_v36 = vpop.permute.xlu1 %484  ;;  %v377_v38 = vpop.permute.xlu0 %376 }
 0x16c   :  { %1384 = vmatmul.mubr.msk.bf16.vlgmr.msra.gmra.mrb[8].mxu0 %vm114_vm2, %v271_v29  ;;  %v490_v40 = vsel %vm114_vm2, %v485_v36, 0 }
 0x16d   :  { %1394 = vmatpush3.bf16.xpose.msra.mxu0 %v384_v35  ;;  %1395 = vmatprep.mubr.msk.bf16.mxu0 %vm1633_vm1, %v1632_v8 }
 0x16e   :  { %1405 = vmatprep.subr.bf16.mxu0 %v1632_v8 }
 0x16f   :  { %v483_v39 = vpop.permute.xlu1 %482  ;;  %v430_v41 = vpop.permute.xlu0 %429 }
 0x170   :  { %1390 = vmatmul.mubr.msk.bf16.vlgmr.msra.gmra.mrb[8].mxu1 %vm114_vm2, %v1715_v18 }
 0x171   :  { %1400 = vmatpush3.bf16.xpose.msra.mxu1 %v437_v37  ;;  %1401 = vmatprep.mubr.msk.bf16.mxu1 %vm1633_vm1, %v1632_v8 }
 0x172   :  { %1411 = vmatprep.subr.bf16.mxu1 %v1632_v8 }
 0x173   :  { %v737_v42 = vpop.permute.xlu1 %736 }
 0x174   :  { %1396 = vmatmul.mubr.msk.bf16.vlgmr.msra.gmra.mrb[12].mxu0 %vm114_vm2, %v377_v38 }
 0x175   :  { %1406 = vmatpush3.bf16.xpose.msra.mxu0 %v490_v40  ;;  %1407 = vmatprep.mubr.msk.bf16.mxu0 %vm1633_vm1, %v1632_v8 }
 0x176   :  { %1417 = vmatprep.subr.bf16.mxu0 %v1632_v8 }
 0x178   :  { %1402 = vmatmul.mubr.msk.bf16.vlgmr.msra.gmra.mrb[12].mxu1 %vm114_vm2, %v430_v41 }
 0x179   :  { %1412 = vmatpush3.bf16.msra.mxu1 %v737_v42  ;;  %1413 = vmatprep.mubr.msk.bf16.mxu1 %vm1633_vm1, %v1632_v8 }
 0x17a   :  { %1423 = vmatprep.subr.bf16.mxu1 %v1632_v8 }
 0x17c   :  { %1408 = vmatmul.mubr.msk.bf16.vlgmr.msra.gmra.mrb[16].mxu0 %vm114_vm2, %v483_v39 }
 0x17d   :  { %1419 = vmatprep.mubr.msk.bf16.mxu0 %vm1633_vm1, %v1632_v8 }
 0x233   :  { %v155_v43 = vpop.f32.mrb[0].mxu1 }
 0x234   :  { %v1778_v44 = vmul.f32 0.35355338, %v155_v43  ;;  %v1367_v45 = vpop.f32.mrb[1].mxu1 }
 0x235   :  { %v158_v46 = vpop.f32.mrb[2].mxu1 }
 0x236   :  { %v1780_v47 = vmul.f32 0.35355338, %v158_v46  ;;  %v1368_v48 = vpop.f32.mrb[3].mxu1  ;;  %v536_v49 = vsel %vm535_vm3, %v1778_v44, -inf }
 0x237   :  { %537 = vmax.xlane.f32.xlu0 %v536_v49  ;;  %v208_v50 = vpop.f32.mrb[4].mxu0 }
 0x238   :  { %v1784_v51 = vmul.f32 0.35355338, %v208_v50  ;;  %v1373_v52 = vpop.f32.mrb[5].mxu0  ;;  %v539_v53 = vsel %vm535_vm3, %v1780_v47, -inf }
 0x239   :  { %540 = vmax.xlane.f32.xlu1 %v539_v53  ;;  %v211_v54 = vpop.f32.mrb[6].mxu0 }
 0x23a   :  { %v1788_v55 = vmul.f32 0.35355338, %v211_v54  ;;  %v1374_v56 = vpop.f32.mrb[7].mxu0  ;;  %v542_v57 = vsel %vm535_vm3, %v1784_v51, -inf }
 0x23b   :  { %v261_v58 = vpop.f32.mrb[4].mxu1  ;;  %543 = vmax.xlane.f32.xlu0 %v542_v57 }
 0x23c   :  { %v1792_v59 = vmul.f32 0.35355338, %v261_v58  ;;  %v1379_v60 = vpop.f32.mrb[5].mxu1  ;;  %v545_v1 = vsel %vm535_vm3, %v1788_v55, -inf }
 0x23d   :  { %v264_v61 = vpop.f32.mrb[6].mxu1 }
 0x23e   :  { %v1794_v62 = vmul.f32 0.35355338, %v264_v61  ;;  %v1380_v63 = vpop.f32.mrb[7].mxu1  ;;  %v548_v0 = vsel %vm535_vm3, %v1792_v59, -inf }
 0x23f   :  { %549 = vmax.xlane.f32.xlu1 %v548_v0  ;;  %546 = vmax.xlane.f32.xlu0 %v545_v1  ;;  %v314_v2 = vpop.f32.mrb[8].mxu0 }
 0x240   :  { %v1800_v3 = vmul.f32 0.35355338, %v314_v2  ;;  %v1385_v4 = vpop.f32.mrb[9].mxu0  ;;  %v551_v9 = vsel %vm535_vm3, %v1794_v62, -inf }
 0x241   :  { %v317_v5 = vpop.f32.mrb[10].mxu0 }
 0x242   :  { %v1802_v6 = vmul.f32 0.35355338, %v317_v5  ;;  %v1386_v7 = vpop.f32.mrb[11].mxu0  ;;  %v554_v10 = vsel %vm535_vm3, %v1800_v3, -inf }
 0x243   :  { %552 = vmax.xlane.f32.xlu0 %v551_v9  ;;  %555 = vmax.xlane.f32.xlu1 %v554_v10  ;;  %v367_v11 = vpop.f32.mrb[8].mxu1 }
 0x244   :  { %v1808_v12 = vmul.f32 0.35355338, %v367_v11  ;;  %v1391_v13 = vpop.f32.mrb[9].mxu1  ;;  %v557_v17 = vsel %vm535_vm3, %v1802_v6, -inf }
 0x245   :  { %v370_v14 = vpop.f32.mrb[10].mxu1 }
 0x246   :  { %v1810_v15 = vmul.f32 0.35355338, %v370_v14  ;;  %v1392_v16 = vpop.f32.mrb[11].mxu1  ;;  %v560_v20 = vsel %vm535_vm3, %v1808_v12, -inf }
 0x247   :  { %558 = vmax.xlane.f32.xlu0 %v557_v17  ;;  %561 = vmax.xlane.f32.xlu1 %v560_v20  ;;  %v420_v21 = vpop.f32.mrb[12].mxu0 }
 0x248   :  { %v1816_v22 = vmul.f32 0.35355338, %v420_v21  ;;  %v1397_v23 = vpop.f32.mrb[13].mxu0  ;;  %v563_v27 = vsel %vm535_vm3, %v1810_v15, -inf }
 0x249   :  { %v423_v24 = vpop.f32.mrb[14].mxu0 }
 0x24a   :  { %v1818_v25 = vmul.f32 0.35355338, %v423_v24  ;;  %v1398_v26 = vpop.f32.mrb[15].mxu0  ;;  %v566_v28 = vsel %vm535_vm3, %v1816_v22, -inf }
 0x24b   :  { %564 = vmax.xlane.f32.xlu0 %v563_v27  ;;  %567 = vmax.xlane.f32.xlu1 %v566_v28  ;;  %v473_v29 = vpop.f32.mrb[12].mxu1 }
 0x24c   :  { %v1824_v30 = vmul.f32 0.35355338, %v473_v29  ;;  %v1403_v31 = vpop.f32.mrb[13].mxu1  ;;  %v569_v35 = vsel %vm535_vm3, %v1818_v25, -inf }
 0x24d   :  { %v476_v32 = vpop.f32.mrb[14].mxu1 }
 0x24e   :  { %v1826_v33 = vmul.f32 0.35355338, %v476_v32  ;;  %v1404_v34 = vpop.f32.mrb[15].mxu1  ;;  %v572_v36 = vsel %vm535_vm3, %v1824_v30, -inf }
 0x24f   :  { %570 = vmax.xlane.f32.xlu0 %v569_v35  ;;  %v526_v37 = vpop.f32.mrb[16].mxu0  ;;  %573 = vmax.xlane.f32.xlu1 %v572_v36 }
 0x250   :  { %v1832_v38 = vmul.f32 0.35355338, %v526_v37  ;;  %v1409_v39 = vpop.f32.mrb[17].mxu0  ;;  %v575_v45 = vsel %vm535_vm3, %v1826_v33, -inf }
 0x251   :  { %v529_v40 = vpop.f32.mrb[18].mxu0 }
 0x252   :  { %v1834_v41 = vmul.f32 0.35355338, %v529_v40  ;;  %v1410_v42 = vpop.f32.mrb[19].mxu0  ;;  %v578_v43 = vsel %vm535_vm3, %v1832_v38, -inf }
 0x253   :  { %579 = vmax.xlane.f32.xlu1 %v578_v43  ;;  %576 = vmax.xlane.f32.xlu0 %v575_v45 }
 0x254   :  { %v581_v46 = vsel %vm535_vm3, %v1834_v41, -inf }
 0x257   :  { %582 = vmax.xlane.f32.xlu0 %v581_v46 }
 0x264   :  { %830 = vrot.lane.b32.xlu1 %v1717_v19, %s1642_s16 }
 0x268   :  { %877 = vrot.lane.b32.xlu1 %v1717_v19, %s1643_s17 }
 0x26c   :  { %1002 = vrot.lane.b32.xlu1 %v1715_v18, %s1644_s18 }
 0x26d   :  { %783 = vrot.lane.b32.xlu0 %v1717_v19, %s1644_s18 }
 0x271   :  { %955 = vrot.lane.b32.xlu0 %v1715_v18, %s1641_s15 }
 0x2c4   :  { %v538_v48 = vpop.xlane.xlu0 %537 }
 0x2c5   :  { %v584_v49 = vsub.f32 %v1778_v44, %v538_v48 }
 0x2c6   :  { %v541_v50 = vpop.xlane.xlu1 %540 }
 0x2c7   :  { %v600_v52 = vmul.f32 1.442695, %v584_v49  ;;  %v585_v53 = vsub.f32 %v1780_v47, %v541_v50 }
 0x2c8   :  { %v544_v54 = vpop.xlane.xlu0 %543 }
 0x2c9   :  { %1520 = vpow2.f32 %v600_v52  ;;  %v602_v56 = vmul.f32 1.442695, %v585_v53  ;;  %v586_v57 = vsub.f32 %v1784_v51, %v544_v54 }
 0x2cb   :  { %1522 = vpow2.f32 %v602_v56  ;;  %v604_v58 = vmul.f32 1.442695, %v586_v57 }
 0x2cc   :  { %v550_v60 = vpop.xlane.xlu1 %549  ;;  %v547_v61 = vpop.xlane.xlu0 %546 }
 0x2cd   :  { %1524 = vpow2.f32 %v604_v58  ;;  %v588_v19 = vsub.f32 %v1792_v59, %v550_v60  ;;  %v587_v63 = vsub.f32 %v1788_v55, %v547_v61 }
 0x2cf   :  { %v608_v0 = vmul.f32 1.442695, %v588_v19  ;;  %v606_v44 = vmul.f32 1.442695, %v587_v63 }
 0x2d0   :  { %v556_v1 = vpop.xlane.xlu1 %555  ;;  %v553_v2 = vpop.xlane.xlu0 %552 }
 0x2d1   :  { %1526 = vpow2.f32 %v608_v0  ;;  %v590_v47 = vsub.f32 %v1800_v3, %v556_v1  ;;  %v589_v4 = vsub.f32 %v1794_v62, %v553_v2 }
 0x2d2   :  { %1528 = vpow2.f32 %v606_v44 }
 0x2d3   :  { %v1857_v51 = vpop.eup %1520  ;;  %v612_v5 = vmul.f32 1.442695, %v590_v47  ;;  %v610_v7 = vmul.f32 1.442695, %v589_v4 }
 0x2d4   :  { %v562_v9 = vpop.xlane.xlu1 %561  ;;  %v559_v10 = vpop.xlane.xlu0 %558  ;;  %v632_v59 = vsel %vm535_vm3, %v1857_v51, 0.0 }
 0x2d5   :  { %v1861_v55 = vpop.eup %1522  ;;  %1530 = vpow2.f32 %v612_v5  ;;  %v592_v11 = vsub.f32 %v1808_v12, %v562_v9  ;;  %v591_v13 = vsub.f32 %v1802_v6, %v559_v10  ;;  %633 = vadd.xlane.f32.xlu1 %v632_v59 }
 0x2d6   :  { %1532 = vpow2.f32 %v610_v7  ;;  %v635_v62 = vsel %vm535_vm3, %v1861_v55, 0.0 }
 0x2d7   :  { %v1867_v3 = vpop.eup %1524  ;;  %v616_v14 = vmul.f32 1.442695, %v592_v11  ;;  %v614_v16 = vmul.f32 1.442695, %v591_v13  ;;  %636 = vadd.xlane.f32.xlu0 %v635_v62 }
 0x2d8   :  { %v568_v17 = vpop.xlane.xlu1 %567  ;;  %v565_v20 = vpop.xlane.xlu0 %564  ;;  %v638_v21 = vsel %vm535_vm3, %v1867_v3, 0.0 }
 0x2d9   :  { %1534 = vpow2.f32 %v616_v14  ;;  %v594_v12 = vsub.f32 %v1816_v22, %v568_v17  ;;  %v593_v6 = vsub.f32 %v1810_v15, %v565_v20  ;;  %639 = vadd.xlane.f32.xlu1 %v638_v21 }
 0x2da   :  { %1536 = vpow2.f32 %v614_v16 }
 0x2db   :  { %v1873_v23 = vpop.eup %1526  ;;  %v620_v24 = vmul.f32 1.442695, %v594_v12  ;;  %v618_v26 = vmul.f32 1.442695, %v593_v6 }
 0x2dc   :  { %v1875_v27 = vpop.eup %1528  ;;  %v574_v28 = vpop.xlane.xlu1 %573  ;;  %v644_v31 = vsel %vm535_vm3, %v1873_v23, 0.0 }
 0x2dd   :  { %v571_v29 = vpop.xlane.xlu0 %570  ;;  %1538 = vpow2.f32 %v620_v24  ;;  %v596_v32 = vsub.f32 %v1824_v30, %v574_v28  ;;  %645 = vadd.xlane.f32.xlu1 %v644_v31  ;;  %v641_v15 = vsel %vm535_vm3, %v1875_v27, 0.0 }
 0x2de   :  { %v595_v22 = vsub.f32 %v1818_v25, %v571_v29  ;;  %1540 = vpow2.f32 %v618_v26  ;;  %642 = vadd.xlane.f32.xlu0 %v641_v15 }
 0x2df   :  { %v1883_v34 = vpop.eup %1530  ;;  %v624_v35 = vmul.f32 1.442695, %v596_v32 }
 0x2e0   :  { %v622_v36 = vmul.f32 1.442695, %v595_v22  ;;  %v1885_v37 = vpop.eup %1532  ;;  %v580_v39 = vpop.xlane.xlu1 %579  ;;  %v650_v42 = vsel %vm535_vm3, %v1883_v34, 0.0 }
 0x2e1   :  { %v577_v40 = vpop.xlane.xlu0 %576  ;;  %1542 = vpow2.f32 %v624_v35  ;;  %v598_v25 = vsub.f32 %v1832_v38, %v580_v39  ;;  %651 = vadd.xlane.f32.xlu1 %v650_v42  ;;  %v647_v43 = vsel %vm535_vm3, %v1885_v37, 0.0 }
 0x2e2   :  { %v597_v30 = vsub.f32 %v1826_v33, %v577_v40  ;;  %1544 = vpow2.f32 %v622_v36  ;;  %648 = vadd.xlane.f32.xlu0 %v647_v43 }
 0x2e3   :  { %v1893_v45 = vpop.eup %1534  ;;  %v628_v46 = vmul.f32 1.442695, %v598_v25 }
 0x2e4   :  { %v626_v48 = vmul.f32 1.442695, %v597_v30  ;;  %v1895_v49 = vpop.eup %1536  ;;  %v656_v52 = vsel %vm535_vm3, %v1893_v45, 0.0  ;;  %v831_v5 = vpop.permute.xlu1 %830 }
 0x2e5   :  { %v583_v50 = vpop.xlane.xlu0 %582  ;;  %1546 = vpow2.f32 %v628_v46  ;;  %657 = vadd.xlane.f32.xlu1 %v656_v52  ;;  %v653_v33 = vsel %vm535_vm3, %v1895_v49, 0.0 }
 0x2e6   :  { %v599_v38 = vsub.f32 %v1834_v41, %v583_v50  ;;  %1548 = vpow2.f32 %v626_v48  ;;  %654 = vadd.xlane.f32.xlu0 %v653_v33 }
 0x2e7   :  { %v1902_v53 = vpop.eup %1538 }
 0x2e8   :  { %v630_v54 = vmul.f32 1.442695, %v599_v38  ;;  %v1904_v56 = vpop.eup %1540  ;;  %v662_v58 = vsel %vm535_vm3, %v1902_v53, 0.0  ;;  %v878_v7 = vpop.permute.xlu1 %877 }
 0x2e9   :  { %v784_v57 = vpop.permute.xlu0 %783  ;;  %663 = vadd.xlane.f32.xlu1 %v662_v58  ;;  %v659_v41 = vsel %vm535_vm3, %v1904_v56, 0.0 }
 0x2ea   :  { %1550 = vpow2.f32 %v630_v54  ;;  %1418 = vmatpush3.bf16.msra.mxu0 %v784_v57  ;;  %660 = vadd.xlane.f32.xlu0 %v659_v41 }
 0x2eb   :  { %1429 = vmatprep.subr.bf16.mxu0 %v1632_v8  ;;  %v1911_v60 = vpop.eup %1542 }
 0x2ec   :  { %v1913_v61 = vpop.eup %1544  ;;  %v668_v19 = vsel %vm535_vm3, %v1911_v60, 0.0  ;;  %v1935_v9 = vpop.permute.xlu1 %1002 }
 0x2ed   :  { %669 = vadd.xlane.f32.xlu1 %v668_v19  ;;  %v665_v63 = vsel %vm535_vm3, %v1913_v61, 0.0  ;;  %v1937_v10 = vpop.permute.xlu0 %955 }
 0x2ee   :  { %666 = vadd.xlane.f32.xlu0 %v665_v63 }
 0x2ef   :  { %v1919_v0 = vpop.eup %1546 }
 0x2f0   :  { %v1921_v44 = vpop.eup %1548  ;;  %v674_v1 = vsel %vm535_vm3, %v1919_v0, 0.0 }
 0x2f1   :  { %675 = vadd.xlane.f32.xlu1 %v674_v1  ;;  %v671_v2 = vsel %vm535_vm3, %v1921_v44, 0.0 }
 0x2f2   :  { %672 = vadd.xlane.f32.xlu0 %v671_v2 }
 0x2f4   :  { %v1927_v47 = vpop.eup %1550 }
 0x2f5   :  { %v677_v4 = vsel %vm535_vm3, %v1927_v47, 0.0 }
 0x2f6   :  { %678 = vadd.xlane.f32.xlu0 %v677_v4 }
 0x302   :  { %1096 = vrot.lane.b32.xlu1 %v1715_v18, %s1643_s17 }
 0x30c   :  { %1049 = vrot.lane.b32.xlu0 %v1715_v18, %s1642_s16 }
 0x362   :  { %v634_v59 = vpop.xlane.xlu1 %633 }
 0x363   :  { %1552 = vrcp.f32 %v634_v59 }
 0x364   :  { %v637_v11 = vpop.xlane.xlu0 %636 }
 0x365   :  { %1554 = vrcp.f32 %v637_v11 }
 0x366   :  { %v640_v13 = vpop.xlane.xlu1 %639 }
 0x367   :  { %1556 = vrcp.f32 %v640_v13 }
 0x36a   :  { %v646_v62 = vpop.xlane.xlu1 %645 }
 0x36b   :  { %1558 = vrcp.f32 %v646_v62  ;;  %v643_v14 = vpop.xlane.xlu0 %642 }
 0x36c   :  { %1560 = vrcp.f32 %v643_v14 }
 0x36d   :  { %v1553_v16 = vpop.eup %1552 }
 0x36e   :  { %v696_v17 = vmul.f32 %v1553_v16, %v1857_v51  ;;  %v652_v18 = vpop.xlane.xlu1 %651 }
 0x36f   :  { %v1555_v20 = vpop.eup %1554  ;;  %1562 = vrcp.f32 %v652_v18  ;;  %v649_v21 = vpop.xlane.xlu0 %648 }
 0x370   :  { %712 = vst.msk [vmem:[#allocation4] sm:$0xff] %vm535_vm3, %v696_v17  ;;  %v697_v12 = vmul.f32 %v1555_v20, %v1861_v55  ;;  %1564 = vrcp.f32 %v649_v21 }
 0x371   :  { %v1557_v6 = vpop.eup %1556 }
 0x372   :  { %713 = vst.msk [vmem:[#allocation4 + $0x8] sm:$0xff] %vm535_vm3, %v697_v12  ;;  %v698_v24 = vmul.f32 %v1557_v6, %v1867_v3  ;;  %v658_v26 = vpop.xlane.xlu1 %657  ;;  %v728_v28 = vpack.c.bf16 %v697_v12, %v696_v17 }
 0x373   :  { %1566 = vrcp.f32 %v658_v26  ;;  %v655_v29 = vpop.xlane.xlu0 %654 }
 0x374   :  { %714 = vst.msk [vmem:[#allocation4 + $0x10] sm:$0xff] %vm535_vm3, %v698_v24  ;;  %1568 = vrcp.f32 %v655_v29  ;;  %1414 = vmatmul.mubr.msk.bf16.vlgmr.msra.gmra.mrb[16].mxu1 %vm535_vm3, %v728_v28  ;;  %v1518_v28 = vld [vmem:[%s2064_s3] sm:$0xff]  }
 0x375   :  { %v1559_v51 = vpop.eup %1558  ;;  %1424 = vmatpush3.bf16.msra.mxu1 %v831_v5  ;;  %1425 = vmatprep.mubr.msk.bf16.mxu1 %vm1633_vm1, %v1632_v8 }
 0x376   :  { %v1561_v55 = vpop.eup %1560  ;;  %v700_v31 = vmul.f32 %v1559_v51, %v1873_v23  ;;  %v664_v32 = vpop.xlane.xlu1 %663  ;;  %1435 = vmatprep.subr.bf16.mxu1 %v1632_v8 }
 0x377   :  { %v699_v3 = vmul.f32 %v1561_v55, %v1875_v27  ;;  %1570 = vrcp.f32 %v664_v32  ;;  %v661_v22 = vpop.xlane.xlu0 %660  ;;  %v1519_v32 = vld [vmem:[%s2064_s3 + $0x8] sm:$0xff]   ;;  %s1648_s3 = smov [#allocation4]  }
 0x378   :  { %716 = vst.msk [vmem:[#allocation4 + $0x20] sm:$0xff] %vm535_vm3, %v700_v31  ;;  %1572 = vrcp.f32 %v661_v22  ;;  %s1274_s26 = sshll.u32 %s1648_s3, 4  ;;  %s1275_s26 = int_to_ptr.vmem [resolvable:$true] %s1274_s26 }
 0x379   :  { %v1563_v15 = vpop.eup %1562  ;;  %715 = vst.msk [vmem:[#allocation4 + $0x18] sm:$0xff] %vm535_vm3, %v699_v3  ;;  %v729_v35 = vpack.c.bf16 %v699_v3, %v698_v24  ;;  %s1584_s27 = scalar_lea.vmem %s1275_s26, 2048  ;;  %p1589_p1 = scmp.lt.s32.totalorder %s1275_s26, %s1275_s26 }
 0x37a   :  { %v1565_v36 = vpop.eup %1564  ;;  %v702_v39 = vmul.f32 %v1563_v15, %v1883_v34  ;;  %v670_v40 = vpop.xlane.xlu1 %669  ;;  %p1585_p0 = scmp.ne.s32.totalorder %s1275_s26, %s1584_s27  ;;  %p1590_p2 = scmp.lt.s32.totalorder %s1584_s27, %s1584_s27 }
 0x37b   :  { %v701_v23 = vmul.f32 %v1565_v36, %v1885_v37  ;;  %1574 = vrcp.f32 %v670_v40  ;;  %1420 = vmatmul.mubr.msk.bf16.vlgmr.msra.gmra.mrb[20].mxu0 %vm535_vm3, %v729_v35  ;;  %v667_v42 = vpop.xlane.xlu0 %666 }
 0x37c   :  { %718 = vst.msk [vmem:[#allocation4 + $0x30] sm:$0xff] %vm535_vm3, %v702_v39  ;;  %1430 = vmatpush3.bf16.msra.mxu0 %v878_v7  ;;  %1576 = vrcp.f32 %v667_v42  ;;  %1431 = vmatprep.mubr.msk.bf16.mxu0 %vm1633_vm1, %v1632_v8  ;;  %p1591_p3 = por %p1590_p2, %p1589_p1 }
 0x37d   :  { %v1567_v27 = vpop.eup %1566  ;;  %717 = vst.msk [vmem:[#allocation4 + $0x28] sm:$0xff] %vm535_vm3, %v701_v23  ;;  %v730_v25 = vpack.c.bf16 %v701_v23, %v700_v31  ;;  %1441 = vmatprep.subr.bf16.mxu0 %v1632_v8 }
 0x37e   :  { %v1569_v34 = vpop.eup %1568  ;;  %v704_v37 = vmul.f32 %v1567_v27, %v1893_v45  ;;  %v676_v30 = vpop.xlane.xlu1 %675  ;;  %p1592_p4 = pnand %p1591_p3, %p1585_p0 }
 0x37f   :  { %v703_v43 = vmul.f32 %v1569_v34, %v1895_v49  ;;  %1578 = vrcp.f32 %v676_v30  ;;  %1426 = vmatmul.mubr.msk.bf16.vlgmr.msra.gmra.mrb[20].mxu1 %vm535_vm3, %v730_v25  ;;  %v673_v46 = vpop.xlane.xlu0 %672 }
 0x380   :  { %720 = vst.msk [vmem:[#allocation4 + $0x40] sm:$0xff] %vm535_vm3, %v704_v37  ;;  %1436 = vmatpush3.bf16.msra.mxu1 %v1937_v10  ;;  %1580 = vrcp.f32 %v673_v46  ;;  %1437 = vmatprep.mubr.msk.bf16.mxu1 %vm1633_vm1, %v1632_v8 }
 0x381   :  { %v1571_v48 = vpop.eup %1570  ;;  %719 = vst.msk [vmem:[#allocation4 + $0x38] sm:$0xff] %vm535_vm3, %v703_v43  ;;  %v731_v50 = vpack.c.bf16 %v703_v43, %v702_v39  ;;  %1447 = vmatprep.subr.bf16.mxu1 %v1632_v8 }
 0x382   :  { %v1573_v45 = vpop.eup %1572  ;;  %v706_v49 = vmul.f32 %v1571_v48, %v1902_v53  ;;  %v1097_v2 = vpop.permute.xlu1 %1096 }
 0x383   :  { %v705_v52 = vmul.f32 %v1573_v45, %v1904_v56  ;;  %1432 = vmatmul.mubr.msk.bf16.vlgmr.msra.gmra.mrb[24].mxu0 %vm535_vm3, %v731_v50  ;;  %v679_v38 = vpop.xlane.xlu0 %678 }
 0x384   :  { %722 = vst.msk [vmem:[#allocation4 + $0x50] sm:$0xff] %vm535_vm3, %v706_v49  ;;  %1442 = vmatpush3.bf16.msra.mxu0 %v1935_v9  ;;  %1582 = vrcp.f32 %v679_v38  ;;  %1443 = vmatprep.mubr.msk.bf16.mxu0 %vm1633_vm1, %v1632_v8 }
 0x385   :  { %v1575_v33 = vpop.eup %1574  ;;  %721 = vst.msk [vmem:[#allocation4 + $0x48] sm:$0xff] %vm535_vm3, %v705_v52  ;;  %v732_v54 = vpack.c.bf16 %v705_v52, %v704_v37  ;;  %1453 = vmatprep.subr.bf16.mxu0 %v1632_v8 }
 0x386   :  { %v1577_v53 = vpop.eup %1576  ;;  %v708_v56 = vmul.f32 %v1575_v33, %v1911_v60 }
 0x387   :  { %v707_v57 = vmul.f32 %v1577_v53, %v1913_v61  ;;  %1438 = vmatmul.mubr.msk.bf16.vlgmr.msra.gmra.mrb[24].mxu1 %vm535_vm3, %v732_v54  ;;  %v1050_v58 = vpop.permute.xlu0 %1049 }
 0x388   :  { %724 = vst.msk [vmem:[#allocation4 + $0x60] sm:$0xff] %vm535_vm3, %v708_v56  ;;  %1448 = vmatpush3.bf16.msra.mxu1 %v1050_v58  ;;  %1449 = vmatprep.mubr.msk.bf16.mxu1 %vm1633_vm1, %v1632_v8 }
 0x389   :  { %v1579_v41 = vpop.eup %1578  ;;  %723 = vst.msk [vmem:[#allocation4 + $0x58] sm:$0xff] %vm535_vm3, %v707_v57  ;;  %v733_v19 = vpack.c.bf16 %v707_v57, %v706_v49  ;;  %1459 = vmatprep.subr.bf16.mxu1 %v1518_v28 }
 0x38a   :  { %v1581_v63 = vpop.eup %1580  ;;  %v710_v1 = vmul.f32 %v1579_v41, %v1919_v0 }
 0x38b   :  { %v709_v60 = vmul.f32 %v1581_v63, %v1921_v44  ;;  %1444 = vmatmul.mubr.msk.bf16.vlgmr.msra.gmra.mrb[28].mxu0 %vm535_vm3, %v733_v19 }
 0x38c   :  { %726 = vst.msk [vmem:[#allocation4 + $0x70] sm:$0xff] %vm535_vm3, %v710_v1  ;;  %1454 = vmatpush3.bf16.msra.mxu0 %v1097_v2  ;;  %1455 = vmatprep.mubr.msk.bf16.mxu0 %vm1633_vm1, %v1632_v8 }
 0x38d   :  { %725 = vst.msk [vmem:[#allocation4 + $0x68] sm:$0xff] %vm535_vm3, %v709_v60  ;;  %v734_v61 = vpack.c.bf16 %v709_v60, %v708_v56 }
 0x38e   :  { %v1583_v4 = vpop.eup %1582 }
 0x38f   :  { %v711_v5 = vmul.f32 %v1583_v4, %v1927_v47  ;;  %1450 = vmatmul.mubr.msk.bf16.vlgmr.msra.gmra.mrb[28].mxu1 %vm535_vm3, %v734_v61 }
 0x390   :  { %1460 = vmatpush3.bf16.msra.mxu1 %v1518_v28 }
 0x391   :  { %727 = vst.msk [vmem:[#allocation4 + $0x78] sm:$0xff] %vm535_vm3, %v711_v5  ;;  %v735_v0 = vpack.c.bf16 %v711_v5, %v710_v1  ;;  %1461 = vmatprep.subr.bf16.mxu1 %v1519_v32 }
 0x393   :  { %1456 = vmatmul.mubr.msk.bf16.vlgmr.msra.gmra.mrb[32].mxu0 %vm535_vm3, %v735_v0 }
 0x394   :  { %1462 = vmatpush3.bf16.msra.mxu1 %v1519_v32 }
 0x447   :  { %v1997_v44 = vpop.f32.mrb[16].mxu1 }
 0x448   :  { %v1415_v7 = vpop.f32.mrb[17].mxu1 }
 0x449   :  { %v779_v9 = vpop.f32.mrb[18].mxu1 }
 0x44a   :  { %v1416_v10 = vpop.f32.mrb[19].mxu1 }
 0x44e   :  { %v823_v59 = vpop.f32.mrb[20].mxu0 }
 0x44f   :  { %v1421_v8 = vpop.f32.mrb[21].mxu0 }
 0x450   :  { %v826_v11 = vpop.f32.mrb[22].mxu0 }
 0x451   :  { %v1486_v13 = vpack.i.bf16 %v826_v11, %v823_v59  ;;  %v1422_v62 = vpop.f32.mrb[23].mxu0 }
 0x452   :  { %v870_v14 = vpop.f32.mrb[20].mxu1 }
 0x453   :  { %1487 = vrot.lane.b32.xlu0 %v1486_v13, %s1645_s19  ;;  %v1427_v47 = vpop.f32.mrb[21].mxu1 }
 0x454   :  { %v873_v16 = vpop.f32.mrb[22].mxu1 }
 0x455   :  { %v1491_v17 = vpack.i.bf16 %v873_v16, %v870_v14  ;;  %v1428_v18 = vpop.f32.mrb[23].mxu1 }
 0x456   :  { %v917_v20 = vpop.f32.mrb[24].mxu0 }
 0x457   :  { %1492 = vrot.lane.b32.xlu1 %v1491_v17, %s1646_s20  ;;  %v1433_v21 = vpop.f32.mrb[25].mxu0 }
 0x458   :  { %v920_v12 = vpop.f32.mrb[26].mxu0 }
 0x459   :  { %v1496_v6 = vpack.i.bf16 %v920_v12, %v917_v20  ;;  %v1434_v24 = vpop.f32.mrb[27].mxu0 }
 0x45a   :  { %v995_v26 = vpop.f32.mrb[24].mxu1 }
 0x45b   :  { %1497 = vrot.lane.b32.xlu1 %v1496_v6, %s1647_s23  ;;  %v1439_v29 = vpop.f32.mrb[25].mxu1 }
 0x45c   :  { %v998_v51 = vpop.f32.mrb[26].mxu1 }
 0x45d   :  { %v1440_v55 = vpop.f32.mrb[27].mxu1 }
 0x45e   :  { %v1042_v31 = vpop.f32.mrb[28].mxu0 }
 0x45f   :  { %v1445_v3 = vpop.f32.mrb[29].mxu0 }
 0x460   :  { %v1045_v22 = vpop.f32.mrb[30].mxu0 }
 0x461   :  { %v1501_v15 = vpack.i.bf16 %v1045_v22, %v1042_v31  ;;  %v1446_v35 = vpop.f32.mrb[31].mxu0 }
 0x462   :  { %v1089_v36 = vpop.f32.mrb[28].mxu1 }
 0x463   :  { %1502 = vrot.lane.b32.xlu0 %v1501_v15, %s1645_s19  ;;  %v1451_v39 = vpop.f32.mrb[29].mxu1 }
 0x464   :  { %v1092_v40 = vpop.f32.mrb[30].mxu1 }
 0x465   :  { %v1506_v23 = vpack.i.bf16 %v1092_v40, %v1089_v36  ;;  %v1452_v42 = vpop.f32.mrb[31].mxu1 }
 0x466   :  { %v1136_v27 = vpop.f32.mrb[32].mxu0 }
 0x467   :  { %v1457_v25 = vpop.f32.mrb[33].mxu0  ;;  %1507 = vrot.lane.b32.xlu0 %v1506_v23, %s1646_s20 }
 0x468   :  { %v1139_v34 = vpop.f32.mrb[34].mxu0 }
 0x469   :  { %v1511_v37 = vpack.i.bf16 %v1139_v34, %v1136_v27  ;;  %v1458_v30 = vpop.f32.mrb[35].mxu0 }
 0x46b   :  { %1512 = vrot.lane.b32.xlu1 %v1511_v37, %s1647_s23 }
 0x4c5   :  { %v1488_v43 = vpop.permute.xlu0 %1487 }
 0x4c6   :  { %v1490_v48 = vunpack.i.h.bf16 %v1488_v43  ;;  %v1489_v50 = vunpack.i.l.bf16 %v1488_v43 }
 0x4c8   :  { %v949_v38 = vsel %vm114_vm2, %v779_v9, %v1490_v48  ;;  %v948_v33 = vsel %vm114_vm2, %v1997_v44, %v1489_v50 }
 0x4c9   :  { %v1493_v46 = vpop.permute.xlu1 %1492 }
 0x4ca   :  { %v1495_v45 = vunpack.i.h.bf16 %v1493_v46  ;;  %v1494_v49 = vunpack.i.l.bf16 %v1493_v46 }
 0x4cc   :  { %v950_v56 = vsel %vm535_vm3, %v948_v33, %v1494_v49  ;;  %v951_v57 = vsel %vm535_vm3, %v949_v38, %v1495_v45 }
 0x4cd   :  { %v1498_v52 = vpop.permute.xlu1 %1497 }
 0x4ce   :  { %v1500_v54 = vunpack.i.h.bf16 %v1498_v52  ;;  %v1499_v53 = vunpack.i.l.bf16 %v1498_v52 }
 0x4d0   :  { %v953_v58 = vsel %vm952_vm4, %v950_v56, %v1499_v53  ;;  %v954_v41 = vsel %vm952_vm4, %v951_v57, %v1500_v54 }
 0x4d1   :  { %v1173_v19 = vpack.c.bf16 %v954_v41, %v953_v58 }
 0x4d3   :  { %1463 = vmatprep.mubr.msk.bf16.mxu1 %vm54_vm0, %v1173_v19 }
 0x4d5   :  { %v1503_v63 = vpop.permute.xlu0 %1502 }
 0x4d6   :  { %v1505_v60 = vunpack.i.h.bf16 %v1503_v63  ;;  %v1504_v2 = vunpack.i.l.bf16 %v1503_v63 }
 0x4d8   :  { %v1168_v0 = vsel %vm114_vm2, %v998_v51, %v1505_v60  ;;  %v1167_v44 = vsel %vm114_vm2, %v995_v26, %v1504_v2 }
 0x4d9   :  { %v1508_v1 = vpop.permute.xlu0 %1507 }
 0x4da   :  { %v1510_v61 = vunpack.i.h.bf16 %v1508_v1  ;;  %v1509_v4 = vunpack.i.l.bf16 %v1508_v1 }
 0x4dc   :  { %v1169_v10 = vsel %vm535_vm3, %v1167_v44, %v1509_v4  ;;  %v1170_v59 = vsel %vm535_vm3, %v1168_v0, %v1510_v61 }
 0x4dd   :  { %v1513_v5 = vpop.permute.xlu1 %1512 }
 0x4de   :  { %v1515_v7 = vunpack.i.h.bf16 %v1513_v5  ;;  %v1514_v9 = vunpack.i.l.bf16 %v1513_v5 }
 0x4e0   :  { %v1171_v8 = vsel %vm952_vm4, %v1169_v10, %v1514_v9  ;;  %v1172_v11 = vsel %vm952_vm4, %v1170_v59, %v1515_v7 }
 0x4e1   :  { %v1174_v13 = vpack.c.bf16 %v1172_v11, %v1171_v8 }
 0x4e3   :  { %1464 = vmatmul.mubr.msk.bf16.vlgmr.msra.gmra.mrb[32].mxu1 %vm54_vm0, %v1174_v13 }
 0x4e4   :  { %1595 = shalt.err (!%p1592_p4)
}
 0x4e5   :  { %s1596_s30 = scalar_lea.hbm %s2067_s6, 2048 }
 0x4e6   :  { %p1597_p5 = scmp.ne.s32.totalorder %s2067_s6, %s1596_s30  ;;  %p1600_p6 = scmp.lt.u32.totalorder %s1596_s30, %s2067_s6 }
 0x4e8   :  { %p1602_p7 = pnand %p1600_p6, %p1597_p5 }
 0x4ea   :  { %1605 = shalt.err (!%p1602_p7)
}
 0x4eb   :  { %s1649_s0 = smov 128   ;;  %v1310_v62 = vld [vmem:[%s2065_s4] ss:$0 sm:$0xff]  ;;  %s1650_s13 = smov [#allocation2]  }
 0x4ec   :  { %1280 = dma.vmem_to_hbm [thread:$0]  %s1275_s26, 2048, %s2067_s6, [#allocation5], %s1649_s0, %s1649_s0, %s1645_s19  }
 0x4ed   :  { %s1262_s14 = sshll.u32 %s1650_s13, 4  ;;  %s1263_s14 = int_to_ptr.vmem [resolvable:$true] %s1262_s14 }
 0x4ee   :  { %s1606_s4 = scalar_lea.vmem %s1263_s14, 512  ;;  %p1611_p9 = scmp.lt.s32.totalorder %s1263_s14, %s1263_s14 }
 0x4ef   :  { %p1607_p8 = scmp.ne.s32.totalorder %s1263_s14, %s1606_s4  ;;  %p1612_p10 = scmp.lt.s32.totalorder %s1606_s4, %s1606_s4 }
 0x4f1   :  { %p1613_p11 = por %p1612_p10, %p1611_p9 }
 0x4f3   :  { %p1614_p12 = pnand %p1613_p11, %p1607_p8 }
 0x5b6   :  { %v1465_v14 = vpop.f32.mrb[32].mxu1 }
 0x5b7   :  { %v1247_v47 = vadd.f32 %v1465_v14, %v1310_v62  ;;  %v1238_v16 = vpop.f32.mrb[33].mxu1 }
 0x5b8   :  { %v1239_v17 = vadd.f32 %v1310_v62, %v1238_v16  ;;  %v1466_v18 = vpop.f32.mrb[34].mxu1 }
 0x5b9   :  { %1255 = vst.msk [vmem:[#allocation2 + $0x10] sm:$0xff] %vm54_vm0, %v1247_v47  ;;  %v1250_v20 = vadd.f32 %v1466_v18, %v1310_v62  ;;  %v1241_v21 = vpop.f32.mrb[35].mxu1 }
 0x5ba   :  { %1253 = vst.msk [vmem:[#allocation2] sm:$0xff] %vm54_vm0, %v1239_v17  ;;  %v1242_v12 = vadd.f32 %v1310_v62, %v1241_v21 }
 0x5bb   :  { %1256 = vst.msk [vmem:[#allocation2 + $0x18] sm:$0xff] %vm54_vm0, %v1250_v20 }
 0x5bc   :  { %1254 = vst.msk [vmem:[#allocation2 + $0x8] sm:$0xff] %vm54_vm0, %v1242_v12 }
 0x5bd   :  { %1617 = shalt.err (!%p1614_p12)
}
 0x5be   :  { %s1618_s16 = scalar_lea.hbm %s2066_s5, 512 }
 0x5bf   :  { %p1619_p13 = scmp.ne.s32.totalorder %s2066_s5, %s1618_s16  ;;  %p1622_p0 = scmp.lt.u32.totalorder %s1618_s16, %s2066_s5 }
 0x5c1   :  { %p1624_p1 = pnand %p1622_p0, %p1619_p13 }
 0x5c3   :  { %1627 = shalt.err (!%p1624_p1)
}
 0x5c4   :  { %1268 = dma.vmem_to_hbm [thread:$0]  %s1263_s14, 512, %s2066_s5, [#allocation3], %s1649_s0, %s1649_s0, %s1645_s19  }
 0x5c5   :  { %1628 = dma.done.wait [#allocation3], 512  }
 0x5c6   :  { %1629 = vsyncadd [#allocation3], 4294966784 }
 0x5c7   :  { %1630 = dma.done.wait [#allocation5], 2048  }
 0x5c8   :  { %1631 = vsyncadd [#allocation5], 4294965248 }
 0x5c9   :  { %1287 = vsyncpa [#allocation3], 1 }
 0x5ca   :  { %1288 = vsyncpa [#allocation5], 1 }

</bundles_post_ra>
